<compile_context>
chip_gen: v7x
topology: tpu7x:2x2x1
jax: 0.10.0
libtpu: 0.0.40
codegen_flags: <defaults>
</compile_context>

<pallas_src>
import numpy as np

import jax
import jax.numpy as jnp
from jax.experimental import pallas as pl
from jax.experimental.pallas import tpu as pltpu


# ----------------------------------------------------------------------------
# Fused kernel (one batch element per grid step)
# ----------------------------------------------------------------------------
def _decoder_fused_kernel(enc_ref, dec_ref, ah_ref, bw_ref, wsk_ref,
                          w1_ref, w2_ref, bias_ref, o_ref):
    f32, bf16 = jnp.float32, jnp.bfloat16
    H = o_ref.shape[1]
    bias = bias_ref[...]                                     # (3, W*Cout) f32

    # 0/1 row-shift matrices: vertical taps of the 3x3 convs + zero padding.
    r = jax.lax.broadcasted_iota(jnp.int32, (H, H), 0)
    c = jax.lax.broadcasted_iota(jnp.int32, (H, H), 1)
    shift_dn = (r == c + 1).astype(bf16)                     # (S @ x)[y] = x[y-1]
    shift_up = (c == r + 1).astype(bf16)                     # (S @ x)[y] = x[y+1]

    # ---- skip: 1x1 conv + BN + ReLU (block-diagonal weight, lane-dense) ----
    enc = enc_ref[0].astype(bf16)                            # (H, W*Cin)
    skip = jnp.dot(enc, wsk_ref[...], preferred_element_type=f32)
    skip = jnp.maximum(skip + bias[0:1, :], 0.0)             # (H, W*Cout) f32

    # ---- bilinear upsample (align_corners=True) as two f32 matmuls ---------
    dec = dec_ref[0]                                         # (Hin, Win*C) f32
    t = jnp.dot(ah_ref[...], dec, preferred_element_type=f32)      # (H, Win*C)
    dec_up = jnp.dot(t, bw_ref[...], preferred_element_type=f32)   # (H, W*C)

    # ---- fused channel concat: becomes the K axis of decoding1 -------------
    x1 = jnp.concatenate([skip, dec_up], axis=1).astype(bf16)      # (H, 2*W*Cout)

    def conv3x3(x, w_stacked_ref):
        # rows y-1 / y / y+1, zero-padded at the vertical borders
        xm = jnp.dot(shift_dn, x, preferred_element_type=f32).astype(bf16)
        xp = jnp.dot(shift_up, x, preferred_element_type=f32).astype(bf16)
        acc = jnp.dot(xm, w_stacked_ref[0], preferred_element_type=f32)
        acc = acc + jnp.dot(x, w_stacked_ref[1], preferred_element_type=f32)
        acc = acc + jnp.dot(xp, w_stacked_ref[2], preferred_element_type=f32)
        return acc

    # ---- decoding1 / decoding2: 3x3 conv + BN + ReLU ------------------------
    y1 = jnp.maximum(conv3x3(x1, w1_ref) + bias[1:2, :], 0.0)      # (H, W*Cout)
    y2 = jnp.maximum(conv3x3(y1.astype(bf16), w2_ref) + bias[2:3, :], 0.0)

    o_ref[0] = y2.astype(o_ref.dtype)                              # lane-dense store


# ----------------------------------------------------------------------------
# Forward wrapper: NCHW in / NCHW out (like the PyTorch module)
# ----------------------------------------------------------------------------
def decoder_module_forward(ops, enc_nchw, dec_nchw):
    N, Cin, H, W = enc_nchw.shape
    _, Cd, Hin, Win = dec_nchw.shape
    WCout = ops["wsk"].shape[1]
    Cout = WCout // W

    enc = jnp.transpose(enc_nchw, (0, 2, 3, 1)).reshape(N, H, W * Cin)
    dec = jnp.transpose(dec_nchw, (0, 2, 3, 1)).reshape(N, Hin, Win * Cd)

    out = pl.pallas_call(
        _decoder_fused_kernel,
        out_shape=jax.ShapeDtypeStruct((N, H, WCout), jnp.float32),
        grid=(N,),
        in_specs=[
            pl.BlockSpec((1, H, W * Cin), lambda n: (n, 0, 0)),
            pl.BlockSpec((1, Hin, Win * Cd), lambda n: (n, 0, 0)),
            pl.BlockSpec(ops["ah"].shape, lambda n: (0, 0)),
            pl.BlockSpec(ops["bw"].shape, lambda n: (0, 0)),
            pl.BlockSpec(ops["wsk"].shape, lambda n: (0, 0)),
            pl.BlockSpec(ops["w1"].shape, lambda n: (0, 0, 0)),
            pl.BlockSpec(ops["w2"].shape, lambda n: (0, 0, 0)),
            pl.BlockSpec(ops["bias"].shape, lambda n: (0, 0)),
        ],
        out_specs=pl.BlockSpec((1, H, WCout), lambda n: (n, 0, 0)),
        compiler_params=pltpu.CompilerParams(
            dimension_semantics=("parallel",),      # batch across TCs (v7x)
            vmem_limit_bytes=32 * 1024 * 1024),
    )(enc, dec, ops["ah"], ops["bw"], ops["wsk"], ops["w1"], ops["w2"],
      ops["bias"])

    # TODO(synk): at production sizes add a spatial (row-tile) grid axis with a
    # 1-row halo so the second "parallel" axis keeps both v7x TensorCores busy.
    return jnp.transpose(out.reshape(N, H, W, Cout), (0, 3, 1, 2))


# ----------------------------------------------------------------------------
# Parameter construction (deterministic) + BN folding + structured matrices
# ----------------------------------------------------------------------------
def _init_basic_conv(key, in_planes, out_planes, k):
    kw, kg, kb, km, kv = jax.random.split(key, 5)
    w = jax.random.normal(kw, (out_planes, in_planes, k, k), jnp.float32) * 0.1
    gamma = jax.random.uniform(kg, (out_planes,), jnp.float32, 0.5, 1.5)
    beta = jax.random.normal(kb, (out_planes,), jnp.float32) * 0.1
    mean = jax.random.normal(km, (out_planes,), jnp.float32) * 0.1
    var = jax.random.uniform(kv, (out_planes,), jnp.float32, 0.5, 1.5)
    eps = 1e-5
    scale = gamma / jnp.sqrt(var + eps)
    w_folded = w * scale[:, None, None, None]                 # OIHW, BN folded
    bias = beta - scale * mean
    # Quantize folded weight to bf16 once (what the kernel consumes); keep an
    # f32 copy of the *same* values for the pure-JAX reference.
    w_q = w_folded.astype(jnp.bfloat16).astype(jnp.float32)
    return {"w": w_q, "b": bias}


def init_decoder_params(key, in_channels, out_channels):
    k1, k2, k3 = jax.random.split(key, 3)
    return {
        "skip": _init_basic_conv(k1, in_channels, out_channels, 1),
        "decoding1": _init_basic_conv(k2, 2 * out_channels, out_channels, 3),
        "decoding2": _init_basic_conv(k3, out_channels, out_channels, 3),
    }


def _bilinear_matrix(out_size, in_size):
    """Interpolation matrix matching F.upsample(mode='bilinear', align_corners=True)."""
    if out_size == 1 or in_size == 1:
        src = np.zeros((out_size,), np.float32)
    else:
        src = np.arange(out_size, dtype=np.float32) * ((in_size - 1) / (out_size - 1))
    low = np.floor(src).astype(np.int64)
    high = np.minimum(low + 1, in_size - 1)
    frac = (src - low).astype(np.float32)
    M = np.zeros((out_size, in_size), np.float32)
    M[np.arange(out_size), low] += 1.0 - frac
    M[np.arange(out_size), high] += frac
    return M


def _banded_row_weight(wk, W):
    """wk: (Cout, Cin, KW) folded weights of one kernel row ky.
    Returns (W*Cin, W*Cout): horizontal taps + zero padding folded into K."""
    Cout, Cin, KW = wk.shape
    M = np.zeros((W * Cin, W * Cout), np.float32)
    for kx in range(KW):
        blk = wk[:, :, kx].T                                  # (Cin, Cout)
        dx = kx - (KW // 2)
        for xo in range(W):
            xi = xo + dx
            if 0 <= xi < W:
                M[xi * Cin:(xi + 1) * Cin, xo * Cout:(xo + 1) * Cout] = blk
    return M


def build_decoder_operands(params, enc_shape, dec_shape):
    """Precompute the structured matrices consumed by the fused kernel."""
    _, Cin, H, W = enc_shape
    _, Cd, Hin, Win = dec_shape

    w_skip = np.asarray(params["skip"]["w"])[:, :, 0, 0]      # (Cout, Cin)
    w1 = np.asarray(params["decoding1"]["w"])                 # (Cout, 2Cout, 3, 3)
    w2 = np.asarray(params["decoding2"]["w"])                 # (Cout, Cout, 3, 3)
    Cout = w_skip.shape[0]

    # skip 1x1 conv as a block-diagonal matrix acting on the (H, W*Cin) slab.
    wsk = np.kron(np.eye(W, dtype=np.float32), w_skip.T)      # (W*Cin, W*Cout)

    # decoding1: the channel concat [skip | dec_up] becomes stacked K halves.
    w1_rows = []
    for ky in range(3):
        enc_half = _banded_row_weight(w1[:, :Cout, ky, :], W)
        dec_half = _banded_row_weight(w1[:, Cout:, ky, :], W)
        w1_rows.append(np.concatenate([enc_half, dec_half], axis=0))
    w1b = np.stack(w1_rows)                                   # (3, 2*W*Cout, W*Cout)

    w2b = np.stack([_banded_row_weight(w2[:, :, ky, :], W) for ky in range(3)])

    # BN biases, pre-tiled per pixel so they broadcast over the (H, W*Cout) slab.
    bias = np.stack([np.tile(np.asarray(params["skip"]["b"]), W),
                     np.tile(np.asarray(params["decoding1"]["b"]), W),
                     np.tile(np.asarray(params["decoding2"]["b"]), W)])

    # Bilinear (align_corners=True) upsample as two matmuls (identity if no resize).
    if (Hin, Win) != (H, W):
        Ah = _bilinear_matrix(H, Hin)                         # (H, Hin)
        Aw = _bilinear_matrix(W, Win)                         # (W, Win)
    else:
        Ah = np.eye(H, dtype=np.float32)
        Aw = np.eye(W, dtype=np.float32)
    Bw = np.kron(Aw.T, np.eye(Cd, dtype=np.float32))          # (Win*Cd, W*Cd)

    ops = {
        "wsk": jnp.asarray(wsk, jnp.bfloat16),
        "w1": jnp.asarray(w1b, jnp.bfloat16),
        "w2": jnp.asarray(w2b, jnp.bfloat16),
        "bias": jnp.asarray(bias, jnp.float32),
        "ah": jnp.asarray(Ah, jnp.float32),
        "bw": jnp.asarray(Bw, jnp.float32),
    }
    return ops, (Ah, Aw)


# ----------------------------------------------------------------------------
# Pure-JAX reference (same folded / bf16-quantized weights) for validation
# ----------------------------------------------------------------------------
def reference_forward(params, Ah, Aw, enc, dec):
    def conv_bn_relu(x, w, b, pad):
        y = jax.lax.conv_general_dilated(
            x, w, window_strides=(1, 1),
            padding=[(pad, pad), (pad, pad)],
            dimension_numbers=("NCHW", "OIHW", "NCHW"))
        return jnp.maximum(y + b[None, :, None, None], 0.0)

    e = conv_bn_relu(enc, params["skip"]["w"], params["skip"]["b"], 0)
    d = dec
    if d.shape[2] != e.shape[2] or d.shape[3] != e.shape[3]:
        d = jnp.einsum("yh,nchw->ncyw", jnp.asarray(Ah), d)
        d = jnp.einsum("xw,ncyw->ncyx", jnp.asarray(Aw), d)
    x = jnp.concatenate([e, d], axis=1)
    x = conv_bn_relu(x, params["decoding1"]["w"], params["decoding1"]["b"], 1)
    x = conv_bn_relu(x, params["decoding2"]["w"], params["decoding2"]["b"], 1)
    return x


# ----------------------------------------------------------------------------
if __name__ == "__main__":
    key = jax.random.PRNGKey(0)
    k_enc, k_dec, k_par = jax.random.split(key, 3)

    in_channels, out_channels = 4, 8
    N, H, W = 2, 16, 16

    enc_fea = jax.random.normal(k_enc, (N, in_channels, H, W), jnp.float32)
    # dec_fea at half resolution -> exercises the bilinear upsample path.
    dec_fea = jax.random.normal(k_dec, (N, out_channels, H // 2, W // 2),
                                jnp.float32)

    params = init_decoder_params(k_par, in_channels, out_channels)
    ops, (Ah, Aw) = build_decoder_operands(params, enc_fea.shape, dec_fea.shape)

    fwd = jax.jit(decoder_module_forward)
    out = fwd(ops, enc_fea, dec_fea)
    jax.block_until_ready(out)

    assert out.shape == (N, out_channels, H, W), out.shape
    assert bool(jnp.all(out >= 0.0))  # final ReLU

    ref = reference_forward(params, Ah, Aw, enc_fea, dec_fea)
    assert bool(jnp.allclose(out, ref, atol=5e-2, rtol=5e-2)), float(
        jnp.max(jnp.abs(out - ref)))

    print("KERNEL_OK")
</pallas_src>

<mosaic_0001>
module attributes {stable_mosaic.version = 11 : i64} {
  func.func @_decoder_fused_kernel(%arg0: i32, %arg1: memref<1x16x64xf32, #tpu.memory_space<vmem>>, %arg2: memref<1x8x64xf32, #tpu.memory_space<vmem>>, %arg3: memref<16x8xf32, #tpu.memory_space<vmem>>, %arg4: memref<64x128xf32, #tpu.memory_space<vmem>>, %arg5: memref<64x128xbf16, #tpu.memory_space<vmem>>, %arg6: memref<3x256x128xbf16, #tpu.memory_space<vmem>>, %arg7: memref<3x128x128xbf16, #tpu.memory_space<vmem>>, %arg8: memref<3x128xf32, #tpu.memory_space<vmem>>, %arg9: memref<1x16x128xf32, #tpu.memory_space<vmem>>) attributes {dimension_semantics = [#tpu.dimension_semantics<parallel>], iteration_bounds = array<i64: 2>, scalar_prefetch = 0 : i64, scratch_operands = 0 : i64, tpu.core_type = #tpu.core_type<tc>, window_params = [{transform_indices = @transform_0, window_bounds = array<i64: 1, 16, 64>}, {transform_indices = @transform_1, window_bounds = array<i64: 1, 8, 64>}, {pipeline_mode = #tpu.pipeline_mode<synchronous>, transform_indices = @transform_2, window_bounds = array<i64: 16, 8>}, {pipeline_mode = #tpu.pipeline_mode<synchronous>, transform_indices = @transform_3, window_bounds = array<i64: 64, 128>}, {pipeline_mode = #tpu.pipeline_mode<synchronous>, transform_indices = @transform_4, window_bounds = array<i64: 64, 128>}, {pipeline_mode = #tpu.pipeline_mode<synchronous>, transform_indices = @transform_5, window_bounds = array<i64: 3, 256, 128>}, {pipeline_mode = #tpu.pipeline_mode<synchronous>, transform_indices = @transform_6, window_bounds = array<i64: 3, 128, 128>}, {pipeline_mode = #tpu.pipeline_mode<synchronous>, transform_indices = @transform_7, window_bounds = array<i64: 3, 128>}, {transform_indices = @transform_8, window_bounds = array<i64: 1, 16, 128>}]} {
    %c0 = arith.constant 0 : index
    %c0_0 = arith.constant 0 : index
    %0 = vector.load %arg8[%c0, %c0_0] : memref<3x128xf32, #tpu.memory_space<vmem>>, vector<3x128xf32>
    %1 = tpu.iota {dimensions = array<i32: 0>} : vector<16x16xi32>
    %2 = tpu.iota {dimensions = array<i32: 1>} : vector<16x16xi32>
    %c1_i32 = arith.constant 1 : i32
    %3 = vector.broadcast %c1_i32 : i32 to vector<16x16xi32>
    %4 = arith.addi %2, %3 : vector<16x16xi32>
    %5 = arith.cmpi eq, %1, %4 : vector<16x16xi32>
    %6 = arith.extui %5 : vector<16x16xi1> to vector<16x16xi32>
    %7 = arith.sitofp %6 : vector<16x16xi32> to vector<16x16xf32>
    %8 = arith.truncf %7 : vector<16x16xf32> to vector<16x16xbf16>
    %c1_i32_1 = arith.constant 1 : i32
    %9 = vector.broadcast %c1_i32_1 : i32 to vector<16x16xi32>
    %10 = arith.addi %1, %9 : vector<16x16xi32>
    %11 = arith.cmpi eq, %2, %10 : vector<16x16xi32>
    %12 = arith.extui %11 : vector<16x16xi1> to vector<16x16xi32>
    %13 = arith.sitofp %12 : vector<16x16xi32> to vector<16x16xf32>
    %14 = arith.truncf %13 : vector<16x16xf32> to vector<16x16xbf16>
    %c0_2 = arith.constant 0 : index
    %c0_3 = arith.constant 0 : index
    %c0_4 = arith.constant 0 : index
    %15 = vector.load %arg1[%c0_2, %c0_3, %c0_4] : memref<1x16x64xf32, #tpu.memory_space<vmem>>, vector<1x16x64xf32>
    %16 = vector.shape_cast %15 : vector<1x16x64xf32> to vector<16x64xf32>
    %17 = arith.truncf %16 : vector<16x64xf32> to vector<16x64xbf16>
    %c0_5 = arith.constant 0 : index
    %c0_6 = arith.constant 0 : index
    %18 = vector.load %arg5[%c0_5, %c0_6] : memref<64x128xbf16, #tpu.memory_space<vmem>>, vector<64x128xbf16>
    %cst = arith.constant dense<0.000000e+00> : vector<16x128xf32>
    %19 = tpu.matmul %17, %18, %cst {dimension_numbers = #tpu.dot_dimension_numbers<[1], [0], [0], [1], [0, 0, 1, 1], [], []>} : vector<16x64xbf16>, vector<64x128xbf16>, vector<16x128xf32> -> vector<16x128xf32>
    %20 = vector.extract_strided_slice %0 {offsets = [0, 0], sizes = [1, 128], strides = [1, 1]} : vector<3x128xf32> to vector<1x128xf32>
    %21 = vector.broadcast %20 : vector<1x128xf32> to vector<16x128xf32>
    %22 = arith.addf %19, %21 : vector<16x128xf32>
    %cst_7 = arith.constant 0.000000e+00 : f32
    %23 = vector.broadcast %cst_7 : f32 to vector<16x128xf32>
    %24 = arith.maximumf %22, %23 : vector<16x128xf32>
    %c0_8 = arith.constant 0 : index
    %c0_9 = arith.constant 0 : index
    %c0_10 = arith.constant 0 : index
    %25 = vector.load %arg2[%c0_8, %c0_9, %c0_10] : memref<1x8x64xf32, #tpu.memory_space<vmem>>, vector<1x8x64xf32>
    %26 = vector.shape_cast %25 : vector<1x8x64xf32> to vector<8x64xf32>
    %c0_11 = arith.constant 0 : index
    %c0_12 = arith.constant 0 : index
    %27 = vector.load %arg3[%c0_11, %c0_12] : memref<16x8xf32, #tpu.memory_space<vmem>>, vector<16x8xf32>
    %cst_13 = arith.constant dense<0.000000e+00> : vector<16x64xf32>
    %28 = tpu.matmul %27, %26, %cst_13 {dimension_numbers = #tpu.dot_dimension_numbers<[1], [0], [0], [1], [0, 0, 1, 1], [], []>} : vector<16x8xf32>, vector<8x64xf32>, vector<16x64xf32> -> vector<16x64xf32>
    %c0_14 = arith.constant 0 : index
    %c0_15 = arith.constant 0 : index
    %29 = vector.load %arg4[%c0_14, %c0_15] : memref<64x128xf32, #tpu.memory_space<vmem>>, vector<64x128xf32>
    %cst_16 = arith.constant dense<0.000000e+00> : vector<16x128xf32>
    %30 = tpu.matmul %28, %29, %cst_16 {dimension_numbers = #tpu.dot_dimension_numbers<[1], [0], [0], [1], [0, 0, 1, 1], [], []>} : vector<16x64xf32>, vector<64x128xf32>, vector<16x128xf32> -> vector<16x128xf32>
    %31 = tpu.concatenate %24, %30 in 1 : vector<16x128xf32>, vector<16x128xf32> -> vector<16x256xf32>
    %32 = arith.truncf %31 : vector<16x256xf32> to vector<16x256xbf16>
    %cst_17 = arith.constant dense<0.000000e+00> : vector<16x256xf32>
    %33 = tpu.matmul %8, %32, %cst_17 {dimension_numbers = #tpu.dot_dimension_numbers<[1], [0], [0], [1], [0, 0, 1, 1], [], []>} : vector<16x16xbf16>, vector<16x256xbf16>, vector<16x256xf32> -> vector<16x256xf32>
    %34 = arith.truncf %33 : vector<16x256xf32> to vector<16x256xbf16>
    %cst_18 = arith.constant dense<0.000000e+00> : vector<16x256xf32>
    %35 = tpu.matmul %14, %32, %cst_18 {dimension_numbers = #tpu.dot_dimension_numbers<[1], [0], [0], [1], [0, 0, 1, 1], [], []>} : vector<16x16xbf16>, vector<16x256xbf16>, vector<16x256xf32> -> vector<16x256xf32>
    %36 = arith.truncf %35 : vector<16x256xf32> to vector<16x256xbf16>
    %c0_19 = arith.constant 0 : index
    %c0_20 = arith.constant 0 : index
    %c0_21 = arith.constant 0 : index
    %37 = vector.load %arg6[%c0_19, %c0_20, %c0_21] : memref<3x256x128xbf16, #tpu.memory_space<vmem>>, vector<1x256x128xbf16>
    %38 = vector.shape_cast %37 : vector<1x256x128xbf16> to vector<256x128xbf16>
    %cst_22 = arith.constant dense<0.000000e+00> : vector<16x128xf32>
    %39 = tpu.matmul %34, %38, %cst_22 {dimension_numbers = #tpu.dot_dimension_numbers<[1], [0], [0], [1], [0, 0, 1, 1], [], []>} : vector<16x256xbf16>, vector<256x128xbf16>, vector<16x128xf32> -> vector<16x128xf32>
    %c1 = arith.constant 1 : index
    %c0_23 = arith.constant 0 : index
    %c0_24 = arith.constant 0 : index
    %40 = vector.load %arg6[%c1, %c0_23, %c0_24] : memref<3x256x128xbf16, #tpu.memory_space<vmem>>, vector<1x256x128xbf16>
    %41 = vector.shape_cast %40 : vector<1x256x128xbf16> to vector<256x128xbf16>
    %cst_25 = arith.constant dense<0.000000e+00> : vector<16x128xf32>
    %42 = tpu.matmul %32, %41, %cst_25 {dimension_numbers = #tpu.dot_dimension_numbers<[1], [0], [0], [1], [0, 0, 1, 1], [], []>} : vector<16x256xbf16>, vector<256x128xbf16>, vector<16x128xf32> -> vector<16x128xf32>
    %43 = arith.addf %39, %42 : vector<16x128xf32>
    %c2 = arith.constant 2 : index
    %c0_26 = arith.constant 0 : index
    %c0_27 = arith.constant 0 : index
    %44 = vector.load %arg6[%c2, %c0_26, %c0_27] : memref<3x256x128xbf16, #tpu.memory_space<vmem>>, vector<1x256x128xbf16>
    %45 = vector.shape_cast %44 : vector<1x256x128xbf16> to vector<256x128xbf16>
    %cst_28 = arith.constant dense<0.000000e+00> : vector<16x128xf32>
    %46 = tpu.matmul %36, %45, %cst_28 {dimension_numbers = #tpu.dot_dimension_numbers<[1], [0], [0], [1], [0, 0, 1, 1], [], []>} : vector<16x256xbf16>, vector<256x128xbf16>, vector<16x128xf32> -> vector<16x128xf32>
    %47 = arith.addf %43, %46 : vector<16x128xf32>
    %48 = vector.extract_strided_slice %0 {offsets = [1, 0], sizes = [1, 128], strides = [1, 1]} : vector<3x128xf32> to vector<1x128xf32>
    %49 = vector.broadcast %48 : vector<1x128xf32> to vector<16x128xf32>
    %50 = arith.addf %47, %49 : vector<16x128xf32>
    %cst_29 = arith.constant 0.000000e+00 : f32
    %51 = vector.broadcast %cst_29 : f32 to vector<16x128xf32>
    %52 = arith.maximumf %50, %51 : vector<16x128xf32>
    %53 = arith.truncf %52 : vector<16x128xf32> to vector<16x128xbf16>
    %cst_30 = arith.constant dense<0.000000e+00> : vector<16x128xf32>
    %54 = tpu.matmul %8, %53, %cst_30 {dimension_numbers = #tpu.dot_dimension_numbers<[1], [0], [0], [1], [0, 0, 1, 1], [], []>} : vector<16x16xbf16>, vector<16x128xbf16>, vector<16x128xf32> -> vector<16x128xf32>
    %55 = arith.truncf %54 : vector<16x128xf32> to vector<16x128xbf16>
    %cst_31 = arith.constant dense<0.000000e+00> : vector<16x128xf32>
    %56 = tpu.matmul %14, %53, %cst_31 {dimension_numbers = #tpu.dot_dimension_numbers<[1], [0], [0], [1], [0, 0, 1, 1], [], []>} : vector<16x16xbf16>, vector<16x128xbf16>, vector<16x128xf32> -> vector<16x128xf32>
    %57 = arith.truncf %56 : vector<16x128xf32> to vector<16x128xbf16>
    %c0_32 = arith.constant 0 : index
    %c0_33 = arith.constant 0 : index
    %c0_34 = arith.constant 0 : index
    %58 = vector.load %arg7[%c0_32, %c0_33, %c0_34] : memref<3x128x128xbf16, #tpu.memory_space<vmem>>, vector<1x128x128xbf16>
    %59 = vector.shape_cast %58 : vector<1x128x128xbf16> to vector<128x128xbf16>
    %cst_35 = arith.constant dense<0.000000e+00> : vector<16x128xf32>
    %60 = tpu.matmul %55, %59, %cst_35 {dimension_numbers = #tpu.dot_dimension_numbers<[1], [0], [0], [1], [0, 0, 1, 1], [], []>} : vector<16x128xbf16>, vector<128x128xbf16>, vector<16x128xf32> -> vector<16x128xf32>
    %c1_36 = arith.constant 1 : index
    %c0_37 = arith.constant 0 : index
    %c0_38 = arith.constant 0 : index
    %61 = vector.load %arg7[%c1_36, %c0_37, %c0_38] : memref<3x128x128xbf16, #tpu.memory_space<vmem>>, vector<1x128x128xbf16>
    %62 = vector.shape_cast %61 : vector<1x128x128xbf16> to vector<128x128xbf16>
    %cst_39 = arith.constant dense<0.000000e+00> : vector<16x128xf32>
    %63 = tpu.matmul %53, %62, %cst_39 {dimension_numbers = #tpu.dot_dimension_numbers<[1], [0], [0], [1], [0, 0, 1, 1], [], []>} : vector<16x128xbf16>, vector<128x128xbf16>, vector<16x128xf32> -> vector<16x128xf32>
    %64 = arith.addf %60, %63 : vector<16x128xf32>
    %c2_40 = arith.constant 2 : index
    %c0_41 = arith.constant 0 : index
    %c0_42 = arith.constant 0 : index
    %65 = vector.load %arg7[%c2_40, %c0_41, %c0_42] : memref<3x128x128xbf16, #tpu.memory_space<vmem>>, vector<1x128x128xbf16>
    %66 = vector.shape_cast %65 : vector<1x128x128xbf16> to vector<128x128xbf16>
    %cst_43 = arith.constant dense<0.000000e+00> : vector<16x128xf32>
    %67 = tpu.matmul %57, %66, %cst_43 {dimension_numbers = #tpu.dot_dimension_numbers<[1], [0], [0], [1], [0, 0, 1, 1], [], []>} : vector<16x128xbf16>, vector<128x128xbf16>, vector<16x128xf32> -> vector<16x128xf32>
    %68 = arith.addf %64, %67 : vector<16x128xf32>
    %69 = vector.extract_strided_slice %0 {offsets = [2, 0], sizes = [1, 128], strides = [1, 1]} : vector<3x128xf32> to vector<1x128xf32>
    %70 = vector.broadcast %69 : vector<1x128xf32> to vector<16x128xf32>
    %71 = arith.addf %68, %70 : vector<16x128xf32>
    %cst_44 = arith.constant 0.000000e+00 : f32
    %72 = vector.broadcast %cst_44 : f32 to vector<16x128xf32>
    %73 = arith.maximumf %71, %72 : vector<16x128xf32>
    %c0_45 = arith.constant 0 : index
    %c0_46 = arith.constant 0 : index
    %c0_47 = arith.constant 0 : index
    %74 = vector.load %arg9[%c0_45, %c0_46, %c0_47] : memref<1x16x128xf32, #tpu.memory_space<vmem>>, vector<1x16x128xf32>
    %75 = vector.shape_cast %74 : vector<1x16x128xf32> to vector<16x128xf32>
    %76 = vector.shape_cast %73 : vector<16x128xf32> to vector<1x16x128xf32>
    tpu.vector_store %arg9[%c0_45, %c0_46, %c0_47], %76 {strides = array<i32>} : memref<1x16x128xf32, #tpu.memory_space<vmem>>, vector<1x16x128xf32>,
    return
  }
  func.func @transform_0(%arg0: i32) -> (i32, i32, i32) {
    %c0_i32 = arith.constant 0 : i32
    %c0_i32_0 = arith.constant 0 : i32
    %c0_i32_1 = arith.constant 0 : i32
    return %arg0, %c0_i32, %c0_i32_0 : i32, i32, i32
  }
  func.func @transform_1(%arg0: i32) -> (i32, i32, i32) {
    %c0_i32 = arith.constant 0 : i32
    %c0_i32_0 = arith.constant 0 : i32
    %c0_i32_1 = arith.constant 0 : i32
    return %arg0, %c0_i32, %c0_i32_0 : i32, i32, i32
  }
  func.func @transform_2(%arg0: i32) -> (i32, i32) {
    %c0_i32 = arith.constant 0 : i32
    %c0_i32_0 = arith.constant 0 : i32
    %c0_i32_1 = arith.constant 0 : i32
    return %c0_i32, %c0_i32_0 : i32, i32
  }
  func.func @transform_3(%arg0: i32) -> (i32, i32) {
    %c0_i32 = arith.constant 0 : i32
    %c0_i32_0 = arith.constant 0 : i32
    %c0_i32_1 = arith.constant 0 : i32
    return %c0_i32, %c0_i32_0 : i32, i32
  }
  func.func @transform_4(%arg0: i32) -> (i32, i32) {
    %c0_i32 = arith.constant 0 : i32
    %c0_i32_0 = arith.constant 0 : i32
    %c0_i32_1 = arith.constant 0 : i32
    return %c0_i32, %c0_i32_0 : i32, i32
  }
  func.func @transform_5(%arg0: i32) -> (i32, i32, i32) {
    %c0_i32 = arith.constant 0 : i32
    %c0_i32_0 = arith.constant 0 : i32
    %c0_i32_1 = arith.constant 0 : i32
    %c0_i32_2 = arith.constant 0 : i32
    return %c0_i32, %c0_i32_0, %c0_i32_1 : i32, i32, i32
  }
  func.func @transform_6(%arg0: i32) -> (i32, i32, i32) {
    %c0_i32 = arith.constant 0 : i32
    %c0_i32_0 = arith.constant 0 : i32
    %c0_i32_1 = arith.constant 0 : i32
    %c0_i32_2 = arith.constant 0 : i32
    return %c0_i32, %c0_i32_0, %c0_i32_1 : i32, i32, i32
  }
  func.func @transform_7(%arg0: i32) -> (i32, i32) {
    %c0_i32 = arith.constant 0 : i32
    %c0_i32_0 = arith.constant 0 : i32
    %c0_i32_1 = arith.constant 0 : i32
    return %c0_i32, %c0_i32_0 : i32, i32
  }
  func.func @transform_8(%arg0: i32) -> (i32, i32, i32) {
    %c0_i32 = arith.constant 0 : i32
    %c0_i32_0 = arith.constant 0 : i32
    %c0_i32_1 = arith.constant 0 : i32
    return %arg0, %c0_i32, %c0_i32_0 : i32, i32, i32
  }
}

</mosaic_0001>

<bundles_post_ra>
// kernel: decoder_module_forward.1
= control target key start
LH: loop header
LB: loop body
LE: loop exit
PB: predicated region body
PF: predicated region fallthrough
CT: control target
= control target key end

     0   :  { %s2287_s27 = smov 0   ;;  %s2657_s0 = inlined_call_operand.vmem [shape: f32[2,16,64], index: 0, kind: input, shape index: {}]   ;;  %s2658_s1 = inlined_call_operand.vmem [shape: f32[2,8,64], index: 1, kind: input, shape index: {}]   ;;  %s2659_s2 = inlined_call_operand.vmem [shape: f32[16,8], index: 2, kind: input, shape index: {}]   ;;  %s2660_s3 = inlined_call_operand.vmem [shape: f32[64,128], index: 3, kind: input, shape index: {}]   ;;  %s2661_s4 = inlined_call_operand.vmem [shape: bf16[64,128], index: 4, kind: input, shape index: {}]   ;;  %s2662_s5 = inlined_call_operand.vmem [shape: bf16[3,256,128], index: 5, kind: input, shape index: {}]   ;;  %s2663_s6 = inlined_call_operand.vmem [shape: bf16[3,128,128], index: 6, kind: input, shape index: {}]   ;;  %s2664_s7 = inlined_call_operand.vmem [shape: f32[3,128], index: 7, kind: input, shape index: {}]   ;;  %s2665_s8 = inlined_call_operand.vmem [shape: f32[2,16,128], index: 8, kind: output, shape index: {}]  }
   0x1 LB: > { %s1706_s28 = sadd.s32 4294967295, %s2237_s27   ;;  %p1710_p0 = scmp.ge.s32.totalorder %s2237_s27, 1  ;;  %s2237_s27 = sphi %s2287_s27, %s18_s27  }
   0x2   : > { %p271_p1 = scmp.lt.s32.totalorder %s2237_s27, 3 }
   0x4   : > { %p272_p2 = pnand %p1710_p0, %p271_p1 }
   0x5   : > { %p309_p3 = scmp.lt.s32.totalorder (!%p272_p2), %s1706_s28, 1  ;;  %v434_v0 = vld [vmem:[%s2659_s2] sm:$0xff] (!%p272_p2)  ;;  %vm436_vm0 = vcmask (!%p272_p2), 64512   ;;  %v2239_v2 = vmov (!%p272_p2), 0.0   ;;  %v2156_v3 = vld [vmem:[%s2661_s4 + $0x8] sm:$0xff] (!%p272_p2)   ;;  %vm2240_vm1 = vmmov (!%p272_p2), 0   ;;  %v325_v23 = vlaneseq (!%p272_p2) }
   0x6   : > { %275 = sbr.rel (%p272_p2) target bundleno = 1351 (0x547), region = 52  ;;  %v2155_v1 = vld [vmem:[%s2661_s4] sm:$0xff] (!%p272_p2)   ;;  %2034 = vmatprep.mubr.msk.f32.mxu1 (!%p272_p2), %vm436_vm0, %v434_v0  ;;  %2020 = vmatprep.subr.bf16.mxu0 (!%p272_p2), %v2239_v2  ;;  %v519_v5 = vld [vmem:[%s2660_s3 + $0x8] sm:$0xff] (!%p272_p2)  ;;  %v520_v6 = vld [vmem:[%s2660_s3 + $0x10] sm:$0xff] (!%p272_p2)  ;;  %vm386_vm2 = vcmask (!%p272_p2), 523264   ;;  %v2241_v39 = vmov (!%p272_p2), 0  }
   0x7   : > { %2021 = vmatpush3.bf16.msra.mxu0 (!%p272_p2), %v2155_v1  ;;  %v518_v4 = vld [vmem:[%s2660_s3] sm:$0xff] (!%p272_p2)  ;;  %2028 = vmatprep.mubr.msk.bf16.mxu0 (!%p272_p2), %vm2240_vm1, %v2239_v2  ;;  %v521_v7 = vld [vmem:[%s2660_s3 + $0x18] sm:$0xff] (!%p272_p2)  ;;  %v435_v10 = vld [vmem:[%s2659_s2 + $0x8] sm:$0xff] (!%p272_p2)  ;;  %v2358_v24 = vshrl.u32 (!%p272_p2), %v325_v23, 7  ;;  %v329_v53 = vand.u32 (!%p272_p2), 127, %v325_v23  ;;  %vm609_vm5 = vcmask (!%p272_p2), 130048  }
   0x8   : > { %2022 = vmatprep.subr.bf16.mxu0 (!%p272_p2), %v2239_v2  ;;  %v2128_v8 = vpack.c.bf16 (!%p272_p2), %v519_v5, %v518_v4  ;;  %v2157_v11 = vld [vmem:[%s2661_s4 + $0x10] sm:$0xff] (!%p272_p2)   ;;  %v2132_v12 = vpack.c.bf16 (!%p272_p2), %v521_v7, %v520_v6  ;;  %v522_v13 = vld [vmem:[%s2660_s3 + $0x20] sm:$0xff] (!%p272_p2)  ;;  %v2158_v16 = vld [vmem:[%s2661_s4 + $0x18] sm:$0xff] (!%p272_p2)  }
   0x9   : > { %v523_v17 = vld [vmem:[%s2660_s3 + $0x28] sm:$0xff] (!%p272_p2)  ;;  %v524_v18 = vld [vmem:[%s2660_s3 + $0x30] sm:$0xff] (!%p272_p2)  ;;  %v525_v19 = vld [vmem:[%s2660_s3 + $0x38] sm:$0xff] (!%p272_p2)  ;;  %v360_v27 = vsub.s32 (!%p272_p2), 0, %v2358_v24  ;;  %v327_v54 = vadd.s32 (!%p272_p2), 8, %v2358_v24  ;;  %v330_v55 = vadd.s32 (!%p272_p2), 1, %v329_v53 }
   0xa   : > { %v2136_v20 = vpack.c.bf16 (!%p272_p2), %v523_v17, %v522_v13  ;;  %v2140_v22 = vpack.c.bf16 (!%p272_p2), %v525_v19, %v524_v18  ;;  %v2365_v28 = vld [vmem:[%s2664_s7] sm:$0x7] (!%p272_p2)  ;;  %v2177_v42 = vld [vmem:[%s2662_s5 + $0x48] sm:$0xff] (!%p272_p2)   ;;  %v2179_v44 = vld [vmem:[%s2662_s5 + $0x50] sm:$0xff] (!%p272_p2)   ;;  %v338_v61 = vadd.s32 (!%p272_p2), 1, %v2358_v24 }
   0xb   : > { %2023 = vmatpush3.bf16.msra.mxu0 (!%p272_p2), %v2156_v3  ;;  %v361_v29 = vrot.slane (!%p272_p2), %v2365_v28, %v360_v27  ;;  %v2175_v40 = vld [vmem:[%s2662_s5 + $0x40] sm:$0xff] (!%p272_p2)   ;;  %v2178_v43 = vld [vmem:[%s2662_s5 + $0x8] sm:$0xff] (!%p272_p2)   ;;  %v2181_v45 = vld [vmem:[%s2662_s5 + $0x10] sm:$0xff] (!%p272_p2)   ;;  %vm331_vm3 = vcmp.eq.s32.totalorder (!%p272_p2), %v2358_v24, %v330_v55  ;;  %vm332_vm4 = vcmp.eq.s32.totalorder (!%p272_p2), %v327_v54, %v330_v55  ;;  %v339_v62 = vadd.s32 (!%p272_p2), 1, %v327_v54 }
   0xc   : > { %2024 = vmatprep.subr.bf16.mxu0 (!%p272_p2), %v2239_v2  ;;  %v2176_v41 = vld [vmem:[%s2662_s5] sm:$0xff] (!%p272_p2)   ;;  %v2183_v46 = vld [vmem:[%s2662_s5 + $0x58] sm:$0xff] (!%p272_p2)   ;;  %v2191_v50 = vld [vmem:[%s2662_s5 + $0x68] sm:$0xff] (!%p272_p2)   ;;  %v1716_v58 = vsel (!%p272_p2), %vm331_vm3, 1.0, %v2239_v2  ;;  %v1717_v59 = vsel (!%p272_p2), %vm332_vm4, 1.0, %v2239_v2  ;;  %vm340_vm6 = vcmp.eq.s32.totalorder (!%p272_p2), %v329_v53, %v338_v61 }
   0xd   : > { %s2667_s28 = smov (!%p309_p3, %s1706_s28), 1  ;;  %v2185_v47 = vld [vmem:[%s2662_s5 + $0x18] sm:$0xff]   ;;  %v2187_v48 = vld [vmem:[%s2662_s5 + $0x60] sm:$0xff]   ;;  %v2193_v51 = vld [vmem:[%s2662_s5 + $0x28] sm:$0xff]   ;;  %v2415_v63 = vpack.c.bf16 %v1717_v59, %v1716_v58  ;;  %vm341_vm7 = vcmp.eq.s32.totalorder %v329_v53, %v339_v62  ;;  %v1718_v1 = vsel %vm340_vm6, 1.0, %v2239_v2 }
   0xe   : > { %s1903_s17 = sshll.u32 %s2667_s28, 4  ;;  %s1713_s18 = sshll.u32 %s2667_s28, 3  ;;  %v2189_v49 = vld [vmem:[%s2662_s5 + $0x20] sm:$0xff]   ;;  %v2195_v52 = vld [vmem:[%s2662_s5 + $0x70] sm:$0xff]   ;;  %v1719_v3 = vsel %vm341_vm7, 1.0, %v2239_v2  ;;  %v2161_v6 = vld [vmem:[%s2662_s5 + $0xc8] sm:$0xff]  }
   0xf   : > { %s313_s25 = scalar_lea.vmem %s2657_s0, %s1903_s17  ;;  %s317_s30 = scalar_lea.vmem %s2658_s1, %s1713_s18  ;;  %2025 = vmatpush3.bf16.msra.mxu0 %v2157_v11  ;;  %v2159_v0 = vld [vmem:[%s2662_s5 + $0xc0] sm:$0xff]   ;;  %v2426_v4 = vpack.c.bf16 %v1719_v3, %v1718_v1  ;;  %v2162_v7 = vld [vmem:[%s2662_s5 + $0x88] sm:$0xff]   ;;  %v2166_v11 = vld [vmem:[%s2662_s5 + $0x98] sm:$0xff]  }
  0x10   : > { %v433_v9 = vld [vmem:[%s317_s30] sm:$0xff]  ;;  %v348_v15 = vld [vmem:[%s313_s25 + $0x8] sm:$0xff]  ;;  %2026 = vmatprep.subr.bf16.mxu0 %v2239_v2  ;;  %v2172_v17 = vld [vmem:[%s2662_s5 + $0xb0] sm:$0xff]   ;;  %s322_s20 = scalar_lea.vmem %s2665_s8, %s1903_s17 }
  0x11   : > { %2032 = vmatprep.subr.mxu1 %v433_v9  ;;  %v347_v14 = vld [vmem:[%s313_s25] sm:$0xff]  ;;  %v2173_v18 = vld [vmem:[%s2662_s5 + $0xf8] sm:$0xff]   ;;  %v2186_v23 = vld [vmem:[%s2662_s5 + $0x108] sm:$0xff]  }
  0x12   : > { %2033 = vmatpush3.msra.mxu1 %v433_v9  ;;  %v349_v21 = vpack.c.bf16 %v348_v15, %v347_v14  ;;  %v2160_v5 = vld [vmem:[%s2662_s5 + $0x80] sm:$0xff]   ;;  %v2164_v9 = vld [vmem:[%s2662_s5 + $0x90] sm:$0xff]   ;;  %v2169_v14 = vld [vmem:[%s2662_s5 + $0xe8] sm:$0xff]  }
  0x13   : > { %2035 = vmatmul.mubr.msk.f32.vlgmr.msra.gmra.mrb[0].mxu1 %vm436_vm0, %v435_v10  ;;  %2129 = vmatprep.subr.bf16.mxu1 %v2128_v8  ;;  %v2165_v10 = vld [vmem:[%s2662_s5 + $0xd8] sm:$0xff]   ;;  %v2168_v13 = vld [vmem:[%s2662_s5 + $0xa0] sm:$0xff]   ;;  %v2170_v15 = vld [vmem:[%s2662_s5 + $0xa8] sm:$0xff]  }
  0x14   : > { %2131 = vmatpush3.bf16.msra.mxu1 %v2128_v8  ;;  %2027 = vmatpush3.bf16.msra.mxu0 %v2158_v16  ;;  %v2163_v8 = vld [vmem:[%s2662_s5 + $0xd0] sm:$0xff]   ;;  %v2174_v19 = vld [vmem:[%s2662_s5 + $0xb8] sm:$0xff]   ;;  %v2215_v59 = vld [vmem:[%s2663_s6] sm:$0xff]  }
  0x15   : > { %2133 = vmatprep.subr.bf16.mxu1 %v2132_v12  ;;  %1945 = vmatprep.subr.bf16.mxu0 %v2175_v40  ;;  %v2171_v16 = vld [vmem:[%s2662_s5 + $0xf0] sm:$0xff]   ;;  %v2192_v27 = vld [vmem:[%s2662_s5 + $0x158] sm:$0xff]   ;;  %v2223_v1 = vld [vmem:[%s2663_s6 + $0x28] sm:$0xff]  }
  0x16   : > { %v2206_v40 = vld [vmem:[%s2662_s5 + $0x138] sm:$0xff]   ;;  %v2217_v61 = vld [vmem:[%s2663_s6 + $0x10] sm:$0xff]  }
  0x17   : > { %2029 = vmatmul.mubr.msk.bf16.vlgmr.msra.gmra.mrb[0].mxu0 %vm386_vm2, %v349_v21  ;;  %v2182_v21 = vld [vmem:[%s2662_s5 + $0x100] sm:$0xff]   ;;  %v2219_v62 = vld [vmem:[%s2663_s6 + $0x18] sm:$0xff]   ;;  %v2225_v3 = vld [vmem:[%s2663_s6 + $0x30] sm:$0xff]  }
  0x18   : > { %2135 = vmatpush3.bf16.msra.mxu1 %v2132_v12  ;;  %1946 = vmatpush3.bf16.msra.mxu0 %v2176_v41  ;;  %v2167_v12 = vld [vmem:[%s2662_s5 + $0xe0] sm:$0xff]  }
  0x19   : > { %2137 = vmatprep.subr.bf16.mxu1 %v2136_v20  ;;  %1947 = vmatprep.subr.bf16.mxu0 %v2177_v42 }
  0x1c   : > { %2139 = vmatpush3.bf16.msra.mxu1 %v2136_v20  ;;  %1948 = vmatpush3.bf16.msra.mxu0 %v2178_v43  ;;  %v2180_v20 = vld [vmem:[%s2662_s5 + $0x140] sm:$0xff]  }
  0x1d   : > { %2141 = vmatprep.subr.bf16.mxu1 %v2140_v22  ;;  %1949 = vmatprep.subr.bf16.mxu0 %v2179_v44 }
  0x20   : > { %2143 = vmatpush3.bf16.msra.mxu1 %v2140_v22  ;;  %1950 = vmatpush3.bf16.msra.mxu0 %v2181_v45  ;;  %v2184_v22 = vld [vmem:[%s2662_s5 + $0x148] sm:$0xff]  }
  0x21   : > { %1951 = vmatprep.subr.bf16.mxu0 %v2183_v46 }
  0x24   : > { %1952 = vmatpush3.bf16.msra.mxu0 %v2185_v47 }
  0x25   : > { %1953 = vmatprep.subr.bf16.mxu0 %v2187_v48 }
  0x28   : > { %1954 = vmatpush3.bf16.msra.mxu0 %v2189_v49 }
  0x29   : > { %1955 = vmatprep.subr.bf16.mxu0 %v2191_v50 }
  0x2c   : > { %1956 = vmatpush3.bf16.msra.mxu0 %v2193_v51 }
  0x2d   : > { %1957 = vmatprep.subr.bf16.mxu0 %v2195_v52 }
  0xe6   : > { %v2036_v25 = vpop.f32.mrb[0].mxu1 }
  0xe7   : > { %v509_v26 = vpop.f32.mrb[1].mxu1 }
  0xe8   : > { %2053 = vmatprep.mubr.msk.f32.mxu1 %vm386_vm2, %v509_v26  ;;  %v2190_v26 = vld [vmem:[%s2662_s5 + $0x110] sm:$0xff]  }
  0xe9   : > { %2054 = vmatmul.mubr.msk.f32.vlgmr.msra.gmra.mrb[2].mxu1 %vm386_vm2, %v2036_v25  ;;  %v2188_v25 = vld [vmem:[%s2662_s5 + $0x150] sm:$0xff]  }
  0xea   : > { %v424_v30 = vpop.f32.mrb[0].mxu0  ;;  %645 = vmatprep.mubr.bf16.mxu1 %v2241_v39 }
  0xeb   : > { %v425_v31 = vadd.f32 %v424_v30, %v361_v29  ;;  %v2030_v32 = vpop.f32.mrb[1].mxu0  ;;  %v2196_v30 = vld [vmem:[%s2662_s5 + $0x160] sm:$0xff]  }
  0xec   : > { %v427_v33 = vpop.f32.mrb[2].mxu0  ;;  %v2198_v32 = vld [vmem:[%s2662_s5 + $0x120] sm:$0xff]  }
  0xed   : > { %v431_v34 = vmax.f32 %v425_v31, 0.0  ;;  %v428_v35 = vadd.f32 %v427_v33, %v361_v29  ;;  %v2031_v36 = vpop.f32.mrb[3].mxu0  ;;  %v2194_v29 = vld [vmem:[%s2662_s5 + $0x118] sm:$0xff]   ;;  %v2197_v31 = vld [vmem:[%s2662_s5 + $0x30] sm:$0xff]  }
  0xee   : > { %1958 = vmatpush3.bf16.msra.mxu0 %v2197_v31  ;;  %v2199_v33 = vld [vmem:[%s2662_s5 + $0x78] sm:$0xff]   ;;  %v2202_v36 = vld [vmem:[%s2662_s5 + $0x128] sm:$0xff]  }
  0xef   : > { %v432_v37 = vmax.f32 %v428_v35, 0.0  ;;  %v2201_v35 = vld [vmem:[%s2662_s5 + $0x38] sm:$0xff]   ;;  %1959 = vmatprep.subr.bf16.mxu0 %v2199_v33  ;;  %v2208_v31 = vld [vmem:[%s2663_s6 + $0x48] sm:$0xff]  }
  0xf0   : > { %v2212_v33 = vld [vmem:[%s2663_s6 + $0x68] sm:$0xff]  }
  0xf1   : > { %v2369_v38 = vpack.c.bf16 %v432_v37, %v431_v34  ;;  %v2200_v34 = vld [vmem:[%s2662_s5 + $0x168] sm:$0xff]   ;;  %v2203_v37 = vld [vmem:[%s2662_s5 + $0x170] sm:$0xff]  }
  0xf2   : > { %1960 = vmatpush3.bf16.msra.mxu0 %v2201_v35  ;;  %v2214_v35 = vld [vmem:[%s2663_s6 + $0x78] sm:$0xff]  }
  0xf3   : > { %2056 = vmatprep.subr.bf16.mxu0 %v2239_v2 }
 0x1bc   : > { %v2055_v56 = vpop.f32.mrb[2].mxu1 }
 0x1bd   : > { %v598_v57 = vpop.f32.mrb[3].mxu1 }
 0x1be   : > { %v608_v60 = vpack.c.bf16 %v2055_v56, %v598_v57 }
 0x1c0   : > { %613 = vmatprep.subr.bf16.mxu1 %v608_v60 }
 0x1c1   : > { %614 = vmatpush1.bf16.msra.mxu1 %v2369_v38 }
 0x1c2   : > { %661 = vmatprep.subr.bf16.mxu1 %v608_v60 }
 0x1c4   : > { %1729 = vmatmul.mubr.msk.bf16.vlgmr.msra.gmra.mrb[4].mxu1 %vm609_vm5, %v2415_v63 }
 0x1c5   : > { %662 = vmatpush1.bf16.msra.mxu1 %v2369_v38  ;;  %693 = vmatprep.mubr.bf16.mxu1 %v2241_v39  ;;  %v2205_v39 = vld [vmem:[%s2662_s5 + $0x178] sm:$0xff]  }
 0x1c6   : > { %1923 = vmatprep.subr.bf16.mxu1 %v2159_v0  ;;  %v2221_v0 = vld [vmem:[%s2663_s6 + $0x20] sm:$0xff]  }
 0x1cc   : > { %1730 = vmatmul.mubr.msk.bf16.vlgmr.msra.gmra.mrb[8].mxu1 %vm609_vm5, %v2426_v4 }
 0x1cd   : > { %1924 = vmatpush3.bf16.msra.mxu1 %v2160_v5  ;;  %899 = vmatprep.mubr.bf16.mxu1 %v608_v60  ;;  %v2216_v60 = vld [vmem:[%s2663_s6 + $0x8] sm:$0xff]  }
 0x1ce   : > { %1925 = vmatprep.subr.bf16.mxu1 %v2161_v6 }
 0x1d1   : > { %1926 = vmatpush3.bf16.msra.mxu1 %v2162_v7 }
 0x1d2   : > { %1927 = vmatprep.subr.bf16.mxu1 %v2163_v8 }
 0x1d5   : > { %1928 = vmatpush3.bf16.msra.mxu1 %v2164_v9 }
 0x1d6   : > { %1929 = vmatprep.subr.bf16.mxu1 %v2165_v10 }
 0x1d9   : > { %1930 = vmatpush3.bf16.msra.mxu1 %v2166_v11 }
 0x1da   : > { %1931 = vmatprep.subr.bf16.mxu1 %v2167_v12 }
 0x1dd   : > { %1932 = vmatpush3.bf16.msra.mxu1 %v2168_v13  ;;  %v1219_v13 = vsub.s32 1, %v2358_v24 }
 0x1de   : > { %1933 = vmatprep.subr.bf16.mxu1 %v2169_v14 }
 0x1e1   : > { %1934 = vmatpush3.bf16.msra.mxu1 %v2170_v15 }
 0x1e2   : > { %1935 = vmatprep.subr.bf16.mxu1 %v2171_v16 }
 0x1e5   : > { %1936 = vmatpush3.bf16.msra.mxu1 %v2172_v17  ;;  %v1220_v17 = vrot.slane %v2365_v28, %v1219_v13 }
 0x1e6   : > { %1937 = vmatprep.subr.bf16.mxu1 %v2173_v18 }
 0x1e9   : > { %1938 = vmatpush3.bf16.msra.mxu1 %v2174_v19 }
 0x1ea   : > { %1967 = vmatprep.subr.bf16.mxu1 %v2180_v20 }
 0x1ec   : > { %900 = vmatmul.mubr.bf16.vlgmr.msra.gmra.mrb[12].mxu1 %v2369_v38  ;;  %v2204_v38 = vld [vmem:[%s2662_s5 + $0x130] sm:$0xff]  }
 0x1ed   : > { %1968 = vmatpush3.bf16.msra.mxu1 %v2182_v21 }
 0x1ee   : > { %1969 = vmatprep.subr.bf16.mxu1 %v2184_v22 }
 0x1f1   : > { %1970 = vmatpush3.bf16.msra.mxu1 %v2186_v23 }
 0x1f2   : > { %1971 = vmatprep.subr.bf16.mxu1 %v2188_v25 }
 0x1f5   : > { %1972 = vmatpush3.bf16.msra.mxu1 %v2190_v26 }
 0x1f6   : > { %1973 = vmatprep.subr.bf16.mxu1 %v2192_v27 }
 0x1f9   : > { %1974 = vmatpush3.bf16.msra.mxu1 %v2194_v29 }
 0x1fa   : > { %1975 = vmatprep.subr.bf16.mxu1 %v2196_v30  ;;  %v2207_v30 = vld [vmem:[%s2663_s6 + $0x40] sm:$0xff]  }
 0x1fd   : > { %1976 = vmatpush3.bf16.msra.mxu1 %v2198_v32  ;;  %v2211_v32 = vld [vmem:[%s2663_s6 + $0x60] sm:$0xff]  }
 0x1fe   : > { %1977 = vmatprep.subr.bf16.mxu1 %v2200_v34  ;;  %v2213_v34 = vld [vmem:[%s2663_s6 + $0x70] sm:$0xff]  }
 0x201   : > { %1978 = vmatpush3.bf16.msra.mxu1 %v2202_v36  ;;  %v2218_v36 = vld [vmem:[%s2663_s6 + $0x80] sm:$0xff]  }
 0x202   : > { %1979 = vmatprep.subr.bf16.mxu1 %v2203_v37  ;;  %v2220_v37 = vld [vmem:[%s2663_s6 + $0x88] sm:$0xff]  }
 0x205   : > { %1980 = vmatpush3.bf16.msra.mxu1 %v2204_v38  ;;  %v2222_v38 = vld [vmem:[%s2663_s6 + $0x90] sm:$0xff]  }
 0x206   : > { %1981 = vmatprep.subr.bf16.mxu1 %v2205_v39  ;;  %v2224_v39 = vld [vmem:[%s2663_s6 + $0x98] sm:$0xff]  }
 0x209   : > { %1982 = vmatpush3.bf16.msra.mxu1 %v2206_v40  ;;  %v2226_v40 = vld [vmem:[%s2663_s6 + $0xa0] sm:$0xff]  }
 0x20a   : > { %2088 = vmatprep.subr.bf16.mxu1 %v2239_v2 }
 0x297   : > { %v647_v41 = vpop.f32.mrb[4].mxu1 }
 0x298   : > { %v649_v42 = vpop.f32.mrb[5].mxu1 }
 0x299   : > { %v651_v43 = vpop.f32.mrb[6].mxu1 }
 0x29a   : > { %v656_v44 = vpack.c.bf16 %v651_v43, %v647_v41  ;;  %v653_v45 = vpop.f32.mrb[7].mxu1  ;;  %v2227_v41 = vld [vmem:[%s2663_s6 + $0x38] sm:$0xff]   ;;  %v2229_v43 = vld [vmem:[%s2663_s6 + $0xb0] sm:$0xff]  }
 0x29b   : > { %v657_v46 = vpack.c.bf16 %v653_v45, %v649_v42  ;;  %v2228_v42 = vld [vmem:[%s2663_s6 + $0xa8] sm:$0xff]  }
 0x29d   : > { %1036 = vmatprep.mubr.bf16.mxu0 %v657_v46 }
 0x29e   : > { %1037 = vmatmul.mubr.bf16.vlgmr.msra.gmra.mrb[4].mxu0 %v656_v44  ;;  %v2230_v44 = vld [vmem:[%s2663_s6 + $0xb8] sm:$0xff]  }
 0x29f   : > { %v695_v47 = vpop.f32.mrb[8].mxu1  ;;  %2058 = vmatprep.mubr.msk.bf16.mxu0 %vm2240_vm1, %v2239_v2 }
 0x2a0   : > { %v697_v48 = vpop.f32.mrb[9].mxu1 }
 0x2a1   : > { %v699_v49 = vpop.f32.mrb[10].mxu1 }
 0x2a2   : > { %v704_v50 = vpack.c.bf16 %v699_v49, %v695_v47  ;;  %v701_v51 = vpop.f32.mrb[11].mxu1 }
 0x2a3   : > { %v705_v52 = vpack.c.bf16 %v701_v51, %v697_v48 }
 0x2a5   : > { %1206 = vmatprep.mubr.bf16.mxu1 %v705_v52 }
 0x2a6   : > { %1207 = vmatmul.mubr.bf16.vlgmr.msra.gmra.mrb[16].mxu1 %v704_v50 }
 0x2a7   : > { %2104 = vmatprep.mubr.msk.bf16.mxu1 %vm2240_vm1, %v2239_v2  ;;  %2089 = vmatpush3.bf16.msra.mxu1 %v2215_v59 }
 0x2a8   : > { %2090 = vmatprep.subr.bf16.mxu1 %v2239_v2 }
 0x2ab   : > { %2091 = vmatpush3.bf16.msra.mxu1 %v2216_v60 }
 0x2ac   : > { %2092 = vmatprep.subr.bf16.mxu1 %v2239_v2 }
 0x2af   : > { %2093 = vmatpush3.bf16.msra.mxu1 %v2217_v61 }
 0x2b0   : > { %2094 = vmatprep.subr.bf16.mxu1 %v2239_v2 }
 0x2b3   : > { %2095 = vmatpush3.bf16.msra.mxu1 %v2219_v62 }
 0x2b4   : > { %2096 = vmatprep.subr.bf16.mxu1 %v2239_v2 }
 0x2b7   : > { %2097 = vmatpush3.bf16.msra.mxu1 %v2221_v0 }
 0x2b8   : > { %2098 = vmatprep.subr.bf16.mxu1 %v2239_v2 }
 0x2bb   : > { %2099 = vmatpush3.bf16.msra.mxu1 %v2223_v1  ;;  %v1631_v1 = vsub.s32 2, %v2358_v24 }
 0x2bc   : > { %2100 = vmatprep.subr.bf16.mxu1 %v2239_v2 }
 0x2bf   : > { %v1939_v53 = vpop.f32.mrb[12].mxu1  ;;  %2101 = vmatpush3.bf16.msra.mxu1 %v2225_v3  ;;  %v1632_v3 = vrot.slane %v2365_v28, %v1631_v1 }
 0x2c0   : > { %v1940_v54 = vpop.f32.mrb[13].mxu1  ;;  %2102 = vmatprep.subr.bf16.mxu1 %v2239_v2 }
 0x2c1   : > { %v1941_v55 = vadd.f32 %v1940_v54, %v1939_v53  ;;  %v1942_v56 = vpop.f32.mrb[14].mxu1 }
 0x2c2   : > { %v1943_v57 = vpop.f32.mrb[15].mxu1 }
 0x2c3   : > { %v1944_v58 = vadd.f32 %v1943_v57, %v1942_v56  ;;  %2103 = vmatpush3.bf16.msra.mxu1 %v2227_v41 }
 0x371   : > { %v1961_v5 = vpop.f32.mrb[4].mxu0 }
 0x372   : > { %v1962_v6 = vpop.f32.mrb[5].mxu0 }
 0x373   : > { %v1963_v7 = vadd.f32 %v1962_v6, %v1961_v5  ;;  %v1964_v8 = vpop.f32.mrb[6].mxu0 }
 0x374   : > { %v1965_v9 = vpop.f32.mrb[7].mxu0 }
 0x375   : > { %v1039_v10 = vadd.f32 %v1963_v7, %v1941_v55  ;;  %v1966_v11 = vadd.f32 %v1965_v9, %v1964_v8 }
 0x377   : > { %v1042_v12 = vadd.f32 %v1966_v11, %v1944_v58 }
 0x379   : > { %v1983_v14 = vpop.f32.mrb[16].mxu1 }
 0x37a   : > { %v1984_v15 = vpop.f32.mrb[17].mxu1 }
 0x37b   : > { %v1985_v16 = vadd.f32 %v1984_v15, %v1983_v14  ;;  %v1986_v18 = vpop.f32.mrb[18].mxu1 }
 0x37c   : > { %v1987_v19 = vpop.f32.mrb[19].mxu1 }
 0x37d   : > { %v1215_v20 = vadd.f32 %v1985_v16, %v1039_v10  ;;  %v1988_v21 = vadd.f32 %v1987_v19, %v1986_v18 }
 0x37f   : > { %v1221_v22 = vadd.f32 %v1220_v17, %v1215_v20  ;;  %v1216_v23 = vadd.f32 %v1988_v21, %v1042_v12 }
 0x381   : > { %v1222_v25 = vadd.f32 %v1220_v17, %v1216_v23  ;;  %v1223_v26 = vmax.f32 %v1221_v22, 0.0 }
 0x383   : > { %v1224_v27 = vmax.f32 %v1222_v25, 0.0 }
 0x385   : > { %v1225_v29 = vpack.c.bf16 %v1224_v27, %v1223_v26 }
 0x387   : > { %2057 = vmatpush3.bf16.msra.mxu0 %v1225_v29 }
 0x388   : > { %2062 = vmatprep.subr.bf16.mxu0 %v2239_v2 }
 0x38a   : > { %2059 = vmatmul.mubr.msk.bf16.vlgmr.msra.gmra.mrb[8].mxu0 %vm609_vm5, %v2415_v63  ;;  %v2209_v63 = vld [vmem:[%s2663_s6 + $0x50] sm:$0xff]  }
 0x38b   : > { %2063 = vmatpush3.bf16.msra.mxu0 %v1225_v29  ;;  %2064 = vmatprep.mubr.msk.bf16.mxu0 %vm2240_vm1, %v2239_v2 }
 0x38c   : > { %2068 = vmatprep.subr.bf16.mxu0 %v2239_v2 }
 0x392   : > { %2065 = vmatmul.mubr.msk.bf16.vlgmr.msra.gmra.mrb[12].mxu0 %vm609_vm5, %v2426_v4  ;;  %v2210_v4 = vld [vmem:[%s2663_s6 + $0x58] sm:$0xff]  }
 0x393   : > { %2069 = vmatpush3.bf16.msra.mxu0 %v2207_v30  ;;  %2084 = vmatprep.mubr.msk.bf16.mxu0 %vm2240_vm1, %v2239_v2 }
 0x394   : > { %2070 = vmatprep.subr.bf16.mxu0 %v2239_v2 }
 0x397   : > { %2071 = vmatpush3.bf16.msra.mxu0 %v2208_v31 }
 0x398   : > { %2072 = vmatprep.subr.bf16.mxu0 %v2239_v2 }
 0x39b   : > { %2073 = vmatpush3.bf16.msra.mxu0 %v2209_v63 }
 0x39c   : > { %2074 = vmatprep.subr.bf16.mxu0 %v2239_v2 }
 0x39f   : > { %2075 = vmatpush3.bf16.msra.mxu0 %v2210_v4 }
 0x3a0   : > { %2076 = vmatprep.subr.bf16.mxu0 %v2239_v2 }
 0x3a3   : > { %2077 = vmatpush3.bf16.msra.mxu0 %v2211_v32 }
 0x3a4   : > { %2078 = vmatprep.subr.bf16.mxu0 %v2239_v2 }
 0x3a7   : > { %2079 = vmatpush3.bf16.msra.mxu0 %v2212_v33 }
 0x3a8   : > { %2080 = vmatprep.subr.bf16.mxu0 %v2239_v2 }
 0x3ab   : > { %2081 = vmatpush3.bf16.msra.mxu0 %v2213_v34 }
 0x3ac   : > { %2082 = vmatprep.subr.bf16.mxu0 %v2239_v2 }
 0x3af   : > { %2083 = vmatpush3.bf16.msra.mxu0 %v2214_v35 }
 0x3b0   : > { %2108 = vmatprep.subr.bf16.mxu0 %v2239_v2 }
 0x3b2   : > { %2085 = vmatmul.mubr.bf16.vlgmr.msra.gmra.mrb[16].mxu0 %v1225_v29 }
 0x3b3   : > { %2109 = vmatpush3.bf16.msra.mxu0 %v2218_v36  ;;  %2124 = vmatprep.mubr.msk.bf16.mxu0 %vm2240_vm1, %v2239_v2 }
 0x3b4   : > { %2110 = vmatprep.subr.bf16.mxu0 %v2239_v2 }
 0x3b7   : > { %2111 = vmatpush3.bf16.msra.mxu0 %v2220_v37 }
 0x3b8   : > { %2112 = vmatprep.subr.bf16.mxu0 %v2239_v2 }
 0x3bb   : > { %2113 = vmatpush3.bf16.msra.mxu0 %v2222_v38 }
 0x3bc   : > { %2114 = vmatprep.subr.bf16.mxu0 %v2239_v2 }
 0x3bf   : > { %2115 = vmatpush3.bf16.msra.mxu0 %v2224_v39 }
 0x3c0   : > { %2116 = vmatprep.subr.bf16.mxu0 %v2239_v2 }
 0x3c3   : > { %2117 = vmatpush3.bf16.msra.mxu0 %v2226_v40 }
 0x3c4   : > { %2118 = vmatprep.subr.bf16.mxu0 %v2239_v2 }
 0x3c7   : > { %2119 = vmatpush3.bf16.msra.mxu0 %v2228_v42 }
 0x3c8   : > { %2120 = vmatprep.subr.bf16.mxu0 %v2239_v2 }
 0x3cb   : > { %2121 = vmatpush3.bf16.msra.mxu0 %v2229_v43 }
 0x3cc   : > { %2122 = vmatprep.subr.bf16.mxu0 %v2239_v2 }
 0x3cf   : > { %2123 = vmatpush3.bf16.msra.mxu0 %v2230_v44 }
 0x45d   : > { %v1260_v45 = vpop.f32.mrb[8].mxu0 }
 0x45e   : > { %v2060_v46 = vpop.f32.mrb[9].mxu0 }
 0x45f   : > { %v1263_v47 = vpop.f32.mrb[10].mxu0 }
 0x460   : > { %v1267_v48 = vpack.c.bf16 %v1263_v47, %v1260_v45  ;;  %v2061_v49 = vpop.f32.mrb[11].mxu0 }
 0x462   : > { %2105 = vmatmul.mubr.bf16.vlgmr.msra.gmra.mrb[20].mxu1 %v1267_v48 }
 0x465   : > { %v1302_v50 = vpop.f32.mrb[12].mxu0 }
 0x466   : > { %v2066_v51 = vpop.f32.mrb[13].mxu0 }
 0x467   : > { %v1305_v52 = vpop.f32.mrb[14].mxu0 }
 0x468   : > { %v1309_v53 = vpack.c.bf16 %v1305_v52, %v1302_v50  ;;  %v2067_v54 = vpop.f32.mrb[15].mxu0 }
 0x46a   : > { %2125 = vmatmul.mubr.bf16.vlgmr.msra.gmra.mrb[20].mxu0 %v1309_v53 }
 0x485   : > { %v1425_v55 = vpop.f32.mrb[16].mxu0 }
 0x486   : > { %v2086_v56 = vpop.f32.mrb[17].mxu0 }
 0x487   : > { %v1428_v2 = vpop.f32.mrb[18].mxu0 }
 0x488   : > { %v2087_v57 = vpop.f32.mrb[19].mxu0 }
 0x535   : > { %v1514_v58 = vpop.f32.mrb[20].mxu1 }
 0x536   : > { %v1515_v59 = vadd.f32 %v1514_v58, %v1425_v55  ;;  %v2106_v60 = vpop.f32.mrb[21].mxu1 }
 0x537   : > { %v1517_v61 = vpop.f32.mrb[22].mxu1 }
 0x538   : > { %v1518_v62 = vadd.f32 %v1517_v61, %v1428_v2  ;;  %v2107_v0 = vpop.f32.mrb[23].mxu1 }
 0x53d   : > { %v1620_v5 = vpop.f32.mrb[20].mxu0 }
 0x53e   : > { %v1627_v6 = vadd.f32 %v1620_v5, %v1515_v59  ;;  %v2126_v7 = vpop.f32.mrb[21].mxu0 }
 0x53f   : > { %v1623_v8 = vpop.f32.mrb[22].mxu0 }
 0x540   : > { %v1633_v9 = vadd.f32 %v1632_v3, %v1627_v6  ;;  %v1628_v10 = vadd.f32 %v1623_v8, %v1518_v62  ;;  %v2127_v11 = vpop.f32.mrb[23].mxu0 }
 0x542   : > { %v1635_v12 = vmax.f32 %v1633_v9, 0.0  ;;  %v1634_v13 = vadd.f32 %v1632_v3, %v1628_v10 }
 0x544   : > { %1637 = vst [vmem:[%s322_s20] sm:$0xff] %v1635_v12  ;;  %v1636_v14 = vmax.f32 %v1634_v13, 0.0 }
 0x546   : > { %1638 = vst [vmem:[%s322_s20 + $0x8] sm:$0xff] %v1636_v14 }
 0x547 PF: > { %s18_s27 = sadd.s32 1, %s2237_s27  }
 0x548   : > { %p15_p4 = scmp.ge.s32.totalorder %s18_s27, 4  }
 0x54a   :  { %17 = sbr.rel (!%p15_p4) target bundleno = 1 (0x1), region = 89 }

</bundles_post_ra>
